<compile_context>
chip_gen: v5e
topology: v5e:2x2
jax: 0.10.0
libtpu: 0.0.40
codegen_flags: <defaults>
</compile_context>

<pallas_src>
import jax
import jax.numpy as jnp
from jax import lax
from jax.experimental import pallas as pl
from jax.experimental.pallas import tpu as pltpu


# --------------------------------------------------------------- small utils
def _round_up(x: int, m: int) -> int:
    return ((x + m - 1) // m) * m


def _chip_defaults():
    """Generation-aware (ts_target, tf_target, scoped VMEM budget)."""
    kind = ""
    try:
        kind = jax.devices()[0].device_kind.lower()
    except Exception:
        pass
    vmem = None
    try:
        vmem = int(pltpu.get_tpu_info().vmem_capacity_bytes)
    except Exception:
        vmem = None

    if "v7" in kind:                       # 64 MiB VMEM/TC, ~3.2 TB/s HBM
        ts, tf = 512, 256
        vmem = vmem or 64 * 1024 * 1024
    elif "v6" in kind:                     # 128 MiB VMEM, ~1.4 TB/s HBM
        ts, tf = 768, 512
        vmem = vmem or 128 * 1024 * 1024
    elif "v5" in kind and ("lite" in kind or "v5e" in kind):
        ts, tf = 256, 256                  # v5e: ~240 flops/byte crossover
        vmem = vmem or 128 * 1024 * 1024
    else:                                  # unknown: conservative (v7x-safe)
        ts, tf = 512, 256
        vmem = vmem or 64 * 1024 * 1024
    return ts, tf, vmem * 3 // 4


def _select_tiles(H: int, Fp: int, N: int, ts_target: int, tf_target: int,
                  vmem_budget: int):
    """Alignment-safe (tS, tF) under a full VMEM model.

    tS: multiple of 16 (bf16 sublane pack); tF: multiple of 128 or full Fp.
    VMEM model: 2x double-buffered bf16 weight streams + double-buffered bf16
    x tile + resident f32 out block + f32/bf16 h scratch + biases/cw.
    """
    # --- tF (128-aligned divisor of Fp, or the full F when F < 128) ---
    if Fp < 128:
        tF = Fp
    else:
        tF = 128
        t = (min(tf_target, Fp) // 128) * 128
        while t >= 128:
            if Fp % t == 0:
                tF = t
                break
            t -= 128

    # --- tS (16-aligned, clamped by the real work size) ---
    tS = min(ts_target, _round_up(max(N, 1), 16))
    tS = _round_up(tS, 16)

    def cost(ts, tf):
        w = 2 * 2 * H * tf * 2            # w1 + w2, double-buffered, bf16
        xb = 2 * ts * H * 2               # x tile, double-buffered, bf16
        ob = 2 * ts * H * 4               # resident f32 out (+ writeback buf)
        hb = 6 * ts * tf                  # h f32 + bf16 copy
        misc = 2 * (tf * 4 + H * 4) + 2 * ts * 4 + 64 * 1024
        return w + xb + ob + hb + misc

    # Trade tF down before tS (arithmetic intensity ~ tS flops/weight-byte).
    while cost(tS, tF) > vmem_budget:
        if tF > 128 and Fp % 128 == 0:
            tF = 128
        elif tS > 16:
            tS = max(16, _round_up(tS // 2, 16))
        else:
            break
    return tS, tF


# ----------------------------------------------------- routed expert kernel
def _moe_routed_kernel(te_ref, x_ref, cw_ref, w1_ref, b1_ref, w2_ref, b2_ref,
                       out_ref):
    # te_ref: (m_tiles,) int32 in SMEM — consumed by the index_maps only.
    del te_ref
    f = pl.program_id(1)

    cw = cw_ref[...]                                             # (tS, 1) f32

    # Front expert block: (tS,H)bf16 @ (H,tF)bf16 -> f32; bias + act in f32.
    h = jnp.dot(x_ref[...], w1_ref[0],
                preferred_element_type=jnp.float32) + b1_ref[0]
    h = jnp.maximum(h, 0.0)                     # TODO(synk): HF act stand-in

    # Behind expert block: (tS,tF)bf16 @ (tF,H)bf16 -> f32.
    y = jnp.dot(h.astype(w2_ref.dtype), w2_ref[0],
                preferred_element_type=jnp.float32)

    # First F tile: direct write (no zero-init pass); behind bias added once.
    @pl.when(f == 0)
    def _():
        out_ref[...] = cw * (y + b2_ref[0])

    @pl.when(f != 0)
    def _():
        out_ref[...] += cw * y


def moe_routed_expert(x_sorted, cw_sorted, tile_expert, w1, b1, w2, b2,
                      *, tS, tF, vmem_limit):
    """Grouped expert MLP over the expert-sorted token buffer."""
    PS, H = x_sorted.shape
    E, _, Fp = w1.shape
    m_tiles = PS // tS
    f_tiles = Fp // tF

    flops = 4 * PS * H * Fp                      # two matmuls, 2 flops/MAC
    bytes_accessed = (2 * E * H * Fp * 2         # w1 + w2 (bf16)
                      + PS * H * 2               # x (bf16)
                      + PS * H * 4               # out (f32)
                      + PS * 4                   # combine weights
                      + E * (Fp + H) * 4)        # biases

    grid_spec = pltpu.PrefetchScalarGridSpec(
        num_scalar_prefetch=1,                   # tile -> expert map in SMEM
        grid=(m_tiles, f_tiles),
        in_specs=[
            pl.BlockSpec((tS, H), lambda m, f, te: (m, 0)),            # x
            pl.BlockSpec((tS, 1), lambda m, f, te: (m, 0)),            # cw
            pl.BlockSpec((1, H, tF), lambda m, f, te: (te[m], 0, f)),  # w1
            pl.BlockSpec((1, 1, tF), lambda m, f, te: (te[m], 0, f)),  # b1
            pl.BlockSpec((1, tF, H), lambda m, f, te: (te[m], f, 0)),  # w2
            pl.BlockSpec((1, 1, H), lambda m, f, te: (te[m], 0, 0)),   # b2
        ],
        out_specs=pl.BlockSpec((tS, H), lambda m, f, te: (m, 0)),
    )

    return pl.pallas_call(
        _moe_routed_kernel,
        out_shape=jax.ShapeDtypeStruct((PS, H), jnp.float32),
        grid_spec=grid_spec,
        compiler_params=pltpu.CompilerParams(
            # m (token tiles) shards across v7x's 2 TensorCores; f is the
            # reduction axis for the resident f32 output accumulator.
            dimension_semantics=("parallel", "arbitrary"),
            vmem_limit_bytes=vmem_limit,
        ),
        cost_estimate=pl.CostEstimate(
            flops=flops, transcendentals=0, bytes_accessed=bytes_accessed),
    )(tile_expert, x_sorted, cw_sorted, w1, b1, w2, b2)


# --------------------------------------------------------------- full forward
def expert_parallel_forward(x, params, top_k=2):
    """TopKGate + routed expert MLP + top-k combine (ep_size = 1)."""
    wg, bg, w1, b1, w2, b2 = params
    S, H = x.shape
    E = wg.shape[1]
    F = w1.shape[2]

    ts_target, tf_target, vmem_limit = _chip_defaults()

    x_bf16 = x.astype(jnp.bfloat16)
    xf = x_bf16.astype(jnp.float32)

    # ---- TopKGate: tiny (S,E) math, lane-narrow — leave to XLA ----
    logits = xf @ wg + bg                                        # (S, E)
    probs = jax.nn.softmax(logits, axis=-1)
    top_vals, top_idx = lax.top_k(probs, top_k)
    denom = jnp.clip(top_vals.sum(-1, keepdims=True), 1e-9, None)
    gates = (top_vals / denom).astype(jnp.float32)               # (S, k)

    # ---- pad F to a 128 multiple (zero cols/rows are numerically inert) ----
    Fp = F if F < 128 else _round_up(F, 128)
    if Fp != F:
        w1 = jnp.pad(w1, ((0, 0), (0, 0), (0, Fp - F)))
        b1 = jnp.pad(b1, ((0, 0), (0, 0), (0, Fp - F)))
        w2 = jnp.pad(w2, ((0, 0), (0, Fp - F), (0, 0)))

    N = S * top_k
    tS, tF = _select_tiles(H, Fp, N, ts_target, tf_target, vmem_limit)
    # Static padded sorted length: every expert group rounded up to tS.
    PS = _round_up(N + E * (tS - 1), tS)

    # ---- routed dispatch: sort dispatch entries by expert, tile-pad groups
    # TODO(synk): no capacity-based dropping — all routed tokens are kept.
    expert_flat = top_idx.reshape(-1).astype(jnp.int32)          # (N,)
    weight_flat = gates.reshape(-1)                              # (N,)
    token_flat = jnp.repeat(jnp.arange(S, dtype=jnp.int32), top_k)

    oh = jax.nn.one_hot(expert_flat, E, dtype=jnp.int32)         # (N, E)
    counts = oh.sum(axis=0)                                      # (E,)
    padded_counts = ((counts + tS - 1) // tS) * tS               # mult of tS
    group_end = jnp.cumsum(padded_counts)
    group_start = group_end - padded_counts

    rank = jnp.sum((jnp.cumsum(oh, axis=0) - oh) * oh, axis=1)   # stable rank
    pos = (group_start[expert_flat] + rank).astype(jnp.int32)    # (N,)

    tok_pad = jnp.zeros((PS,), jnp.int32).at[pos].set(token_flat)
    cw_pad = jnp.zeros((PS,), jnp.float32).at[pos].set(weight_flat)

    x_sorted = jnp.take(x_bf16, tok_pad, axis=0)                 # (PS, H)
    cw_sorted = cw_pad.reshape(PS, 1)

    m_tiles = PS // tS
    tile_start = jnp.arange(m_tiles, dtype=jnp.int32) * tS
    tile_expert = jnp.clip(
        jnp.searchsorted(group_end, tile_start, side="right"),
        0, E - 1).astype(jnp.int32)

    out_sorted = moe_routed_expert(x_sorted, cw_sorted, tile_expert,
                                   w1, b1, w2, b2,
                                   tS=tS, tF=tF, vmem_limit=vmem_limit)

    # Un-sort + top-k combine (padding rows carry weight 0 -> contribute 0).
    return jnp.zeros((S, H), jnp.float32).at[tok_pad].add(out_sorted)


# ----------------------------------------------------------------------- main
if __name__ == "__main__":
    S, H, F, E, TOP_K = 8, 32, 64, 4, 2

    key = jax.random.PRNGKey(0)
    kx, kg, k1, k1b, k2, k2b = jax.random.split(key, 6)

    # bf16 activations / expert weights (MXU-native); f32 biases & gate params.
    x = jax.random.normal(kx, (S, H), dtype=jnp.float32).astype(jnp.bfloat16)
    wg = jax.random.normal(kg, (H, E), dtype=jnp.float32) * 0.1
    bg = jnp.zeros((1, E), dtype=jnp.float32)
    w1 = (jax.random.normal(k1, (E, H, F), dtype=jnp.float32) * 0.1
          ).astype(jnp.bfloat16)
    b1 = jax.random.normal(k1b, (E, 1, F), dtype=jnp.float32) * 0.01
    w2 = (jax.random.normal(k2, (E, F, H), dtype=jnp.float32) * 0.1
          ).astype(jnp.bfloat16)
    b2 = jax.random.normal(k2b, (E, 1, H), dtype=jnp.float32) * 0.01

    params = (wg, bg, w1, b1, w2, b2)
    out = expert_parallel_forward(x, params, top_k=TOP_K)
    jax.block_until_ready(out)

    # Pure-JAX reference mirroring the kernel numerics (bf16 operands, f32
    # accumulation, h rounded to bf16 before the behind matmul).
    xf = x.astype(jnp.float32)
    logits_ref = xf @ wg + bg
    probs_ref = jax.nn.softmax(logits_ref, axis=-1)
    tv, ti = lax.top_k(probs_ref, TOP_K)
    mask_ref = jax.nn.one_hot(ti, E, dtype=probs_ref.dtype).sum(axis=1)
    comb_ref = (probs_ref * mask_ref) / jnp.clip(
        tv.sum(-1, keepdims=True), 1e-9, None)
    ref = jnp.zeros((S, H), jnp.float32)
    for e in range(E):
        h = jnp.maximum(xf @ w1[e].astype(jnp.float32) + b1[e], 0.0)
        hb = h.astype(jnp.bfloat16).astype(jnp.float32)
        ref = ref + (hb @ w2[e].astype(jnp.float32) + b2[e]) * comb_ref[:, e:e + 1]

    assert out.shape == (S, H) and out.dtype == jnp.float32
    max_err = float(jnp.max(jnp.abs(out - ref)))
    assert jnp.allclose(out, ref, atol=1e-2, rtol=1e-2), \
        f"mismatch vs reference (max abs err {max_err})"
    print("KERNEL_OK")
</pallas_src>

<mosaic_0001>
module attributes {stable_mosaic.version = 11 : i64} {
  func.func @_moe_routed_kernel(%arg0: i32, %arg1: i32, %arg2: memref<5xi32, #tpu.memory_space<smem>>, %arg3: memref<16x32xbf16, #tpu.memory_space<vmem>>, %arg4: memref<16x1xf32, #tpu.memory_space<vmem>>, %arg5: memref<1x32x64xbf16, #tpu.memory_space<vmem>>, %arg6: memref<1x1x64xf32, #tpu.memory_space<vmem>>, %arg7: memref<1x64x32xbf16, #tpu.memory_space<vmem>>, %arg8: memref<1x1x32xf32, #tpu.memory_space<vmem>>, %arg9: memref<16x32xf32, #tpu.memory_space<vmem>>) attributes {dimension_semantics = [#tpu.dimension_semantics<parallel>, #tpu.dimension_semantics<arbitrary>], iteration_bounds = array<i64: 5, 1>, scalar_prefetch = 1 : i64, scratch_operands = 0 : i64, tpu.core_type = #tpu.core_type<tc>, window_params = [{transform_indices = @transform_0, window_bounds = array<i64: 16, 32>}, {transform_indices = @transform_1, window_bounds = array<i64: 16, 1>}, {transform_indices = @transform_2, window_bounds = array<i64: 1, 32, 64>}, {transform_indices = @transform_3, window_bounds = array<i64: 1, 1, 64>}, {transform_indices = @transform_4, window_bounds = array<i64: 1, 64, 32>}, {transform_indices = @transform_5, window_bounds = array<i64: 1, 1, 32>}, {transform_indices = @transform_6, window_bounds = array<i64: 16, 32>}]} {
    %c0 = arith.constant 0 : index
    %c0_0 = arith.constant 0 : index
    %0 = vector.load %arg4[%c0, %c0_0] : memref<16x1xf32, #tpu.memory_space<vmem>>, vector<16x1xf32>
    %c0_1 = arith.constant 0 : index
    %c0_2 = arith.constant 0 : index
    %1 = vector.load %arg3[%c0_1, %c0_2] : memref<16x32xbf16, #tpu.memory_space<vmem>>, vector<16x32xbf16>
    %c0_3 = arith.constant 0 : index
    %c0_4 = arith.constant 0 : index
    %c0_5 = arith.constant 0 : index
    %2 = vector.load %arg5[%c0_3, %c0_4, %c0_5] : memref<1x32x64xbf16, #tpu.memory_space<vmem>>, vector<1x32x64xbf16>
    %3 = vector.shape_cast %2 : vector<1x32x64xbf16> to vector<32x64xbf16>
    %cst = arith.constant dense<0.000000e+00> : vector<16x64xf32>
    %4 = tpu.matmul %1, %3, %cst {dimension_numbers = #tpu.dot_dimension_numbers<[1], [0], [0], [1], [0, 0, 1, 1], [], []>} : vector<16x32xbf16>, vector<32x64xbf16>, vector<16x64xf32> -> vector<16x64xf32>
    %c0_6 = arith.constant 0 : index
    %c0_7 = arith.constant 0 : index
    %c0_8 = arith.constant 0 : index
    %5 = vector.load %arg6[%c0_6, %c0_7, %c0_8] : memref<1x1x64xf32, #tpu.memory_space<vmem>>, vector<1x1x64xf32>
    %6 = vector.shape_cast %5 : vector<1x1x64xf32> to vector<1x64xf32>
    %7 = vector.broadcast %6 : vector<1x64xf32> to vector<16x64xf32>
    %8 = arith.addf %4, %7 : vector<16x64xf32>
    %cst_9 = arith.constant 0.000000e+00 : f32
    %9 = vector.broadcast %cst_9 : f32 to vector<16x64xf32>
    %10 = arith.maximumf %8, %9 : vector<16x64xf32>
    %11 = arith.truncf %10 : vector<16x64xf32> to vector<16x64xbf16>
    %c0_10 = arith.constant 0 : index
    %c0_11 = arith.constant 0 : index
    %c0_12 = arith.constant 0 : index
    %12 = vector.load %arg7[%c0_10, %c0_11, %c0_12] : memref<1x64x32xbf16, #tpu.memory_space<vmem>>, vector<1x64x32xbf16>
    %13 = vector.shape_cast %12 : vector<1x64x32xbf16> to vector<64x32xbf16>
    %cst_13 = arith.constant dense<0.000000e+00> : vector<16x32xf32>
    %14 = tpu.matmul %11, %13, %cst_13 {dimension_numbers = #tpu.dot_dimension_numbers<[1], [0], [0], [1], [0, 0, 1, 1], [], []>} : vector<16x64xbf16>, vector<64x32xbf16>, vector<16x32xf32> -> vector<16x32xf32>
    %c0_i32 = arith.constant 0 : i32
    %15 = arith.cmpi eq, %arg1, %c0_i32 : i32
    %16 = arith.extui %15 : i1 to i32
    %c0_i32_14 = arith.constant 0 : i32
    %17 = arith.cmpi ne, %16, %c0_i32_14 : i32
    scf.if %17 {
      %c0_17 = arith.constant 0 : index
      %c0_18 = arith.constant 0 : index
      %c0_19 = arith.constant 0 : index
      %21 = vector.load %arg8[%c0_17, %c0_18, %c0_19] : memref<1x1x32xf32, #tpu.memory_space<vmem>>, vector<1x1x32xf32>
      %22 = vector.shape_cast %21 : vector<1x1x32xf32> to vector<1x32xf32>
      %23 = vector.broadcast %22 : vector<1x32xf32> to vector<16x32xf32>
      %24 = arith.addf %14, %23 : vector<16x32xf32>
      %25 = vector.broadcast %0 : vector<16x1xf32> to vector<16x32xf32>
      %26 = arith.mulf %25, %24 : vector<16x32xf32>
      %c0_20 = arith.constant 0 : index
      %c0_21 = arith.constant 0 : index
      %27 = vector.load %arg9[%c0_20, %c0_21] : memref<16x32xf32, #tpu.memory_space<vmem>>, vector<16x32xf32>
      tpu.vector_store %arg9[%c0_20, %c0_21], %26 {strides = array<i32>} : memref<16x32xf32, #tpu.memory_space<vmem>>, vector<16x32xf32>,
    } else {
    }
    %c0_i32_15 = arith.constant 0 : i32
    %18 = arith.cmpi ne, %arg1, %c0_i32_15 : i32
    %19 = arith.extui %18 : i1 to i32
    %c0_i32_16 = arith.constant 0 : i32
    %20 = arith.cmpi ne, %19, %c0_i32_16 : i32
    scf.if %20 {
      %c0_17 = arith.constant 0 : index
      %c0_18 = arith.constant 0 : index
      %21 = vector.load %arg9[%c0_17, %c0_18] : memref<16x32xf32, #tpu.memory_space<vmem>>, vector<16x32xf32>
      %22 = vector.broadcast %0 : vector<16x1xf32> to vector<16x32xf32>
      %23 = arith.mulf %22, %14 : vector<16x32xf32>
      %24 = arith.addf %21, %23 : vector<16x32xf32>
      %c0_19 = arith.constant 0 : index
      %c0_20 = arith.constant 0 : index
      %25 = vector.load %arg9[%c0_19, %c0_20] : memref<16x32xf32, #tpu.memory_space<vmem>>, vector<16x32xf32>
      tpu.vector_store %arg9[%c0_19, %c0_20], %24 {strides = array<i32>} : memref<16x32xf32, #tpu.memory_space<vmem>>, vector<16x32xf32>,
    } else {
    }
    return
  }
  func.func @transform_0(%arg0: i32, %arg1: i32, %arg2: memref<5xi32, #tpu.memory_space<smem>>) -> (i32, i32) {
    %c0_i32 = arith.constant 0 : i32
    %c0_i32_0 = arith.constant 0 : i32
    return %arg0, %c0_i32 : i32, i32
  }
  func.func @transform_1(%arg0: i32, %arg1: i32, %arg2: memref<5xi32, #tpu.memory_space<smem>>) -> (i32, i32) {
    %c0_i32 = arith.constant 0 : i32
    %c0_i32_0 = arith.constant 0 : i32
    return %arg0, %c0_i32 : i32, i32
  }
  func.func @transform_2(%arg0: i32, %arg1: i32, %arg2: memref<5xi32, #tpu.memory_space<smem>>) -> (i32, i32, i32) {
    %0 = arith.index_cast %arg0 : i32 to index
    %1 = memref.load %arg2[%0] : memref<5xi32, #tpu.memory_space<smem>>
    %c0_i32 = arith.constant 0 : i32
    %c0_i32_0 = arith.constant 0 : i32
    return %1, %c0_i32, %arg1 : i32, i32, i32
  }
  func.func @transform_3(%arg0: i32, %arg1: i32, %arg2: memref<5xi32, #tpu.memory_space<smem>>) -> (i32, i32, i32) {
    %0 = arith.index_cast %arg0 : i32 to index
    %1 = memref.load %arg2[%0] : memref<5xi32, #tpu.memory_space<smem>>
    %c0_i32 = arith.constant 0 : i32
    %c0_i32_0 = arith.constant 0 : i32
    return %1, %c0_i32, %arg1 : i32, i32, i32
  }
  func.func @transform_4(%arg0: i32, %arg1: i32, %arg2: memref<5xi32, #tpu.memory_space<smem>>) -> (i32, i32, i32) {
    %0 = arith.index_cast %arg0 : i32 to index
    %1 = memref.load %arg2[%0] : memref<5xi32, #tpu.memory_space<smem>>
    %c0_i32 = arith.constant 0 : i32
    %c0_i32_0 = arith.constant 0 : i32
    return %1, %arg1, %c0_i32 : i32, i32, i32
  }
  func.func @transform_5(%arg0: i32, %arg1: i32, %arg2: memref<5xi32, #tpu.memory_space<smem>>) -> (i32, i32, i32) {
    %0 = arith.index_cast %arg0 : i32 to index
    %1 = memref.load %arg2[%0] : memref<5xi32, #tpu.memory_space<smem>>
    %c0_i32 = arith.constant 0 : i32
    %c0_i32_0 = arith.constant 0 : i32
    %c0_i32_1 = arith.constant 0 : i32
    return %1, %c0_i32, %c0_i32_0 : i32, i32, i32
  }
  func.func @transform_6(%arg0: i32, %arg1: i32, %arg2: memref<5xi32, #tpu.memory_space<smem>>) -> (i32, i32) {
    %c0_i32 = arith.constant 0 : i32
    %c0_i32_0 = arith.constant 0 : i32
    return %arg0, %c0_i32 : i32, i32
  }
}

</mosaic_0001>

<bundles_post_ra>
// kernel: tpu_custom_call.1
= control target key start
LH: loop header
LB: loop body
LE: loop exit
PB: predicated region body
PF: predicated region fallthrough
CT: control target
= control target key end

     0   :  { %s836_s27 = smov [#allocation3]   ;;  %s951_s0 = inlined_call_operand.vmem [shape: s32[5], index: 0, kind: input, shape index: {}]   ;;  %s952_s1 = inlined_call_operand.vmem [shape: bf16[80,32], index: 1, kind: input, shape index: {}]   ;;  %s953_s2 = inlined_call_operand.vmem [shape: f32[80,1], index: 2, kind: input, shape index: {}]   ;;  %s954_s3 = inlined_call_operand.vmem [shape: bf16[4,32,64], index: 3, kind: input, shape index: {}]   ;;  %s955_s4 = inlined_call_operand.vmem [shape: f32[4,1,64], index: 4, kind: input, shape index: {}]   ;;  %s956_s5 = inlined_call_operand.vmem [shape: bf16[4,64,32], index: 5, kind: input, shape index: {}]   ;;  %s957_s6 = inlined_call_operand.vmem [shape: f32[4,1,32], index: 6, kind: input, shape index: {}]   ;;  %s958_s7 = inlined_call_operand.vmem [shape: f32[80,32], index: 7, kind: output, shape index: {}]  }
   0x1   :  { %s13_s26 = sshll.u32 %s951_s0, 4  ;;  %s14_s26 = int_to_ptr.vmem [resolvable:$true] %s13_s26 }
   0x2   :  { %16 = dma.vmem_to_smem %s14_s26, 16, %s836_s27, [#allocation2] }
   0x3   :  { %822 = dma.done.wait [#allocation2], 16 }
   0x4   :  { %823 = vsyncadd [#allocation2], 4294967280 }
   0x5   :  { %19 = sfence }
   0x6   :  { %s881_s28 = smov 0   ;;  %s883_s29 = smov 0  }
   0x7   :  { %s885_s30 = smov 0  }
   0x8 LB: > { %s37_s0 = sadd.s32 1, %s830_s29  ;;  %p717_p0 = scmp.ge.s32.totalorder %s834_s30, 1  ;;  %s834_s30 = sphi %s885_s30, %s25_s30   ;;  %s830_s29 = sphi %s883_s29, %s960_s29   ;;  %s826_s28 = sphi %s881_s28, %s959_s28  }
   0x9   : > { %p39_p1 = scmp.ge.s32.totalorder %s37_s0, 5  ;;  %p314_p2 = scmp.lt.s32.totalorder %s834_s30, 6 }
   0xb   : > { %s962_s0 = smov (%p39_p1, %s37_s0), 0  ;;  %p315_p3 = pnand %p717_p0, %p314_p2 }
   0xc   : > { %s391_s8 = sld [smem:[#allocation3 + %s826_s28]] (!%p315_p3)  ;;  %s718_s9 = sshll.u32 (!%p315_p3), %s826_s28, 1 }
   0xd   : > { %318 = sbr.rel (%p315_p3) target bundleno = 310 (0x136), region = 44  ;;  %p380_p4 = scmp.lt.s32.totalorder (!%p315_p3), %s718_s9, 9 }
   0xe   : > { %s401_s10 = sld [smem:[#allocation3 + %s826_s28]] (!%p315_p3) }
   0xf   : > { %s409_s22 = sld [smem:[#allocation3 + %s826_s28]] (!%p315_p3) }
  0x10   : > { %s421_s27 = sld [smem:[#allocation3 + %s826_s28]] (!%p315_p3) }
  0x12   : > { %s964_s9 = smov (!%p380_p4, %s718_s9), 9  ;;  %p392_p5 = scmp.lt.s32.totalorder %s391_s8, 3  ;;  %vm462_vm0 = vcmask 261120   ;;  %v837_v8 = vmov 0   ;;  %vm515_vm1 = vcmask 523264  }
  0x13   : > { %s719_s12 = sshll.u32 %s964_s9, 2  ;;  %795 = vset.pattern.permute.xlu0 %v837_v8 }
  0x14   : > { %p402_p6 = scmp.lt.s32.totalorder %s401_s10, 3  ;;  %s966_s8 = smov (!%p392_p5, %s391_s8), 3 }
  0x15   : > { %s760_s11 = sshll.u32 %s966_s8, 4  ;;  %s383_s21 = scalar_lea.vmem %s952_s1, %s719_s12 }
  0x16   : > { %s968_s10 = smov (!%p402_p6, %s401_s10), 3  ;;  %s399_s15 = scalar_lea.vmem %s954_s3, %s760_s11  ;;  %v762_v2 = vld [vmem:[%s383_s21] sm:$0xff] }
  0x17   : > { %s407_s18 = scalar_lea.vmem %s955_s4, %s968_s10  ;;  %v764_v0 = vld [vmem:[%s399_s15 + $0x8] sm:$0xff]  ;;  %v763_v1 = vld [vmem:[%s399_s15] sm:$0xff]  ;;  %p411_p7 = scmp.lt.s32.totalorder %s409_s22, 3 }
  0x18   : > { %472 = vmatpush.bf16.msra.mxu0 %v764_v0  ;;  %s721_s8 = sshll.u32 %s964_s9, 3  ;;  %p422_p8 = scmp.lt.s32.totalorder %s421_s27, 3  ;;  %v796_v11 = vld [vmem:[%s407_s18] ss:$0 sm:$0xff] }
  0x19   : > { %s970_s22 = smov (!%p411_p7, %s409_s22), 3  ;;  %s389_s13 = scalar_lea.vmem %s953_s2, %s721_s8 }
  0x1a   : > { %s761_s23 = sshll.u32 %s970_s22, 5  ;;  %s972_s27 = smov (!%p422_p8, %s421_s27), 3  ;;  %v433_v7 = vld [vmem:[%s389_s13] sm:$0xff]  ;;  %v434_v9 = vld [vmem:[%s389_s13 + $0x8] sm:$0xff] }
  0x1b   : > { %s418_s26 = scalar_lea.vmem %s956_s5, %s761_s23  ;;  %s424_s16 = scalar_lea.vmem %s957_s6, %s972_s27  ;;  %545 = vperm.xlu0 %795, %v433_v7  }
  0x1c   : > { %473 = vmatpush.bf16.msra.mxu0 %v763_v1  ;;  %v768_v3 = vld [vmem:[%s418_s26 + $0x18] sm:$0xff]  ;;  %v767_v4 = vld [vmem:[%s418_s26 + $0x10] sm:$0xff]  ;;  %v766_v5 = vld [vmem:[%s418_s26 + $0x8] sm:$0xff]  ;;  %s430_s20 = scalar_lea.vmem %s958_s7, %s721_s8 }
  0x1d   : > { %523 = vmatpush.bf16.msra.mxu1 %v768_v3  ;;  %v765_v6 = vld [vmem:[%s418_s26] sm:$0xff] }
  0x1e   : > { %v797_v18 = vld [vmem:[%s424_s16] ss:$0 sm:$0xff] }
  0x1f   : > { %740 = vmatmul.msk.bf16.vlgmr.msra.gmra.mxu0 %vm462_vm0, %v762_v2 }
  0x21   : > { %524 = vmatpush.bf16.msra.mxu1 %v767_v4 }
  0x23   : > { %550 = vperm.xlu0 %795, %v434_v9  }
  0x25   : > { %525 = vmatpush.bf16.msra.mxu1 %v766_v5 }
  0x29   : > { %526 = vmatpush.bf16.msra.mxu1 %v765_v6 }
  0x8d   : > { %v546_v19 = vpop.permute.xlu0 %545 }
  0x95   : > { %v551_v25 = vpop.permute.xlu0 %550 }
  0x9c   : > { %v475_v10 = vpop.f32.mrf.mxu0 }
  0x9d   : > { %v476_v12 = vadd.f32 %v796_v11, %v475_v10 }
  0x9f   : > { %v480_v15 = vmax.f32 %v476_v12, 0.0 }
  0xa4   : > { %v477_v13 = vpop.f32.mrf.mxu0 }
  0xa5   : > { %v478_v14 = vadd.f32 %v796_v11, %v477_v13 }
  0xa7   : > { %v481_v16 = vmax.f32 %v478_v14, 0.0 }
  0xa9   : > { %v482_v17 = vpack.c.bf16 %v481_v16, %v480_v15 }
  0xab   : > { %757 = vmatmul.msk.bf16.vlgmr.msra.gmra.mxu1 %vm515_vm1, %v482_v17 }
 0x128   : > { %v528_v20 = vpop.f32.mrf.mxu1 }
 0x129   : > { %v541_v21 = vadd.f32 %v797_v18, %v528_v20 }
 0x12b   : > { %v553_v22 = vmul.f32 %v546_v19, %v541_v21 }
 0x12d   : > { %555 = vst.msk [vmem:[%s430_s20] sm:$0xff] %vm462_vm0, %v553_v22 }
 0x130   : > { %v530_v23 = vpop.f32.mrf.mxu1 }
 0x131   : > { %v542_v24 = vadd.f32 %v797_v18, %v530_v23 }
 0x133   : > { %v554_v26 = vmul.f32 %v551_v25, %v542_v24 }
 0x135   : > { %556 = vst.msk [vmem:[%s430_s20 + $0x8] sm:$0xff] %vm462_vm0, %v554_v26 }
 0x136 PF: > { %s25_s30 = sadd.s32 1, %s834_s30   ;;  %s959_s28 = smov %s830_s29 }
 0x137   : > { %p22_p9 = scmp.ge.s32.totalorder %s25_s30, 7   ;;  %s960_s29 = smov %s962_s0 }
 0x139   :  { %24 = sbr.rel (!%p22_p9) target bundleno = 8 (0x8), region = 97 }

</bundles_post_ra>
